<compile_context>
chip_gen: v5e
topology: v5e:2x2
jax: 0.10.0
libtpu: 0.0.40
codegen_flags: <defaults>
</compile_context>

<pallas_src>
import math
from functools import partial

import jax
import jax.numpy as jnp
from jax.experimental import pallas as pl
from jax.experimental.pallas import tpu as pltpu


def _self_attention_kernel(x_ref, wq_ref, bq_ref, wk_ref, bk_ref, wv_ref, bv_ref,
                           ab_ref, wp_ref, bp_ref,
                           o_ref,
                           k_sc, v_sc, acc_sc,
                           *, block_t, n_qb):
    """Grid = (batch, query_block, head); head is the (innermost) reduction axis.

    x_ref     : (1, T, C)        full sequence of this batch element (Q/K/V source)
    wq_ref    : (n_head, C, hd)  per-head Q weight slabs (1/sqrt(hd) pre-folded), resident
    bq_ref    : (n_head, 1, hd)  per-head Q bias (pre-scaled)                    [f32]
    wk/bk, wv/bv                 same layout for K / V
    ab_ref    : (1, BT, T)       bias_proj(bias)[h] tile for (head, query-block)
    wp_ref    : (n_head, hd, C)  per-head output-projection slabs, resident
    bp_ref    : (1, C)           output-projection bias                          [f32]
    o_ref     : (1, BT, C)
    k_sc/v_sc : (n_head, T, hd)  VMEM K/V cache, filled at query-block 0
    acc_sc    : (BT, C) f32      accumulator of the output projection across heads
    """
    qb = pl.program_id(1)
    h = pl.program_id(2)
    f32 = jnp.float32

    # --- K/V projection for this head: computed once per batch element and
    #     cached in VMEM across query blocks (qb axis is "arbitrary"). ---
    @pl.when(qb == 0)
    def _():
        xf = x_ref[0]                                                   # (T, C)
        k = jnp.dot(xf, wk_ref[h], preferred_element_type=f32) + bk_ref[h]
        v = jnp.dot(xf, wv_ref[h], preferred_element_type=f32) + bv_ref[h]
        k_sc[h] = k.astype(k_sc.dtype)
        v_sc[h] = v.astype(v_sc.dtype)

    # --- Query rows of this block, sliced from the resident x block. ---
    if n_qb == 1:
        xq = x_ref[0]                                                   # (BT, C)
    else:
        start = pl.multiple_of(qb * block_t, block_t)
        xq = x_ref[0, pl.ds(start, block_t), :]                         # (BT, C)

    # --- Q projection (attention scale already folded into Wq/bq). ---
    q = jnp.dot(xq, wq_ref[h], preferred_element_type=f32) + bq_ref[h]
    q = q.astype(k_sc.dtype)                                            # (BT, hd)

    # --- attention logits + learned bias; softmax in f32. ---
    att = jax.lax.dot_general(q, k_sc[h], (((1,), (1,)), ((), ())),
                              preferred_element_type=f32)               # (BT, T)
    att = att + ab_ref[0].astype(f32)
    m = jnp.max(att, axis=-1, keepdims=True)
    e = jnp.exp(att - m)
    s = jnp.sum(e, axis=-1, keepdims=True)
    p = (e * pl.reciprocal(s, approx=True)).astype(v_sc.dtype)          # (BT, T)

    y = jnp.dot(p, v_sc[h], preferred_element_type=f32)                 # (BT, hd)

    # --- accumulate this head's share of the output projection. ---
    @pl.when(h == 0)
    def _():
        acc_sc[...] = jnp.zeros_like(acc_sc)

    acc_sc[...] += jnp.dot(y.astype(wp_ref.dtype), wp_ref[h],
                           preferred_element_type=f32)

    @pl.when(h == pl.num_programs(2) - 1)
    def _():
        o_ref[0] = (acc_sc[...] + bp_ref[...]).astype(o_ref.dtype)


def prepare_attention_params(params, *, n_embd, n_head,
                             compute_dtype=jnp.float32):
    """One-time, parameter-only preprocessing (do NOT redo per forward call):
    split c_attn / c_proj into per-head slabs, fold the 1/sqrt(hd) scale into
    the Q slab, and fold bias_proj(bias).permute(2,0,1) into (n_head, T, T)."""
    C = n_embd
    hd = C // n_head
    scale = 1.0 / math.sqrt(hd)
    cd = compute_dtype

    w_attn = params["w_attn"]                      # (3C, C)  torch (out, in)
    b_attn = params["b_attn"]                      # (3C,)

    def per_head(w_rows):                          # (C, C) -> (n_head, C_in, hd)
        return jnp.transpose(w_rows.reshape(n_head, hd, C), (0, 2, 1))

    wq = per_head(w_attn[0 * C:1 * C]) * scale
    wk = per_head(w_attn[1 * C:2 * C])
    wv = per_head(w_attn[2 * C:3 * C])
    bq = (b_attn[0 * C:1 * C] * scale).reshape(n_head, 1, hd)
    bk = b_attn[1 * C:2 * C].reshape(n_head, 1, hd)
    bv = b_attn[2 * C:3 * C].reshape(n_head, 1, hd)

    # out = sum_h y_h @ (w_proj.T)[h*hd:(h+1)*hd, :] + b_proj
    wp = jnp.transpose(params["w_proj"]).reshape(n_head, hd, C)
    bp = params["b_proj"].reshape(1, C)

    # bias_proj(bias).permute(2, 0, 1): parameter-only, folded here once.
    abias = (jnp.einsum("ijf,hf->hij", params["bias"], params["w_bias_proj"])
             + params["b_bias_proj"][:, None, None])         # (n_head, T, T)

    return {
        "wq": wq.astype(cd), "wk": wk.astype(cd), "wv": wv.astype(cd),
        "bq": bq.astype(jnp.float32), "bk": bk.astype(jnp.float32),
        "bv": bv.astype(jnp.float32),
        "wp": wp.astype(cd), "bp": bp.astype(jnp.float32),
        "abias": abias.astype(cd),
    }


def self_attention_pallas(x, prep, *, n_embd, n_head, block_t=None):
    """x: (B, T, C).  prep: output of prepare_attention_params."""
    B, T, C = x.shape
    assert C == n_embd and C % n_head == 0
    hd = C // n_head
    if block_t is None:
        block_t = T if T <= 256 else 256
    assert T % block_t == 0, "block_t must divide T"
    assert block_t == T or block_t % 8 == 0
    n_qb = T // block_t

    cd = prep["wq"].dtype
    xc = x.astype(cd)

    # Explicit VMEM budget: double-buffered blocks + persistent scratch.
    def padded(shape, nbytes):
        s = list(shape)
        s[-1] = -(-s[-1] // 128) * 128
        if len(s) >= 2:
            s[-2] = -(-s[-2] // 8) * 8
        tot = nbytes
        for d in s:
            tot *= d
        return tot

    cb = jnp.dtype(cd).itemsize
    ob = jnp.dtype(x.dtype).itemsize
    blocks = (padded((1, T, C), cb)                       # x (resident per batch)
              + 3 * padded((n_head, C, hd), cb)           # Wq/Wk/Wv (resident)
              + 3 * padded((n_head, 1, hd), 4)            # bq/bk/bv
              + padded((1, block_t, T), cb)               # attn-bias tile
              + padded((n_head, hd, C), cb)               # Wp (resident)
              + padded((1, C), 4)                         # b_proj
              + padded((1, block_t, C), ob))              # output block
    scratch = 2 * padded((n_head, T, hd), cb) + padded((block_t, C), 4)
    vmem_limit = int(min(max(2 * blocks + scratch + (4 << 20), 32 << 20), 64 << 20))

    kernel = partial(_self_attention_kernel, block_t=block_t, n_qb=n_qb)

    return pl.pallas_call(
        kernel,
        out_shape=jax.ShapeDtypeStruct((B, T, C), x.dtype),
        grid_spec=pltpu.PrefetchScalarGridSpec(
            num_scalar_prefetch=0,
            grid=(B, n_qb, n_head),
            in_specs=[
                pl.BlockSpec((1, T, C),        lambda b, q, h: (b, 0, 0)),  # x (Q/K/V src)
                pl.BlockSpec((n_head, C, hd),  lambda b, q, h: (0, 0, 0)),  # Wq (scaled)
                pl.BlockSpec((n_head, 1, hd),  lambda b, q, h: (0, 0, 0)),  # bq
                pl.BlockSpec((n_head, C, hd),  lambda b, q, h: (0, 0, 0)),  # Wk
                pl.BlockSpec((n_head, 1, hd),  lambda b, q, h: (0, 0, 0)),  # bk
                pl.BlockSpec((n_head, C, hd),  lambda b, q, h: (0, 0, 0)),  # Wv
                pl.BlockSpec((n_head, 1, hd),  lambda b, q, h: (0, 0, 0)),  # bv
                pl.BlockSpec((1, block_t, T),  lambda b, q, h: (h, q, 0)),  # attn-bias tile
                pl.BlockSpec((n_head, hd, C),  lambda b, q, h: (0, 0, 0)),  # Wp slabs
                pl.BlockSpec((1, C),           lambda b, q, h: (0, 0)),     # b_proj
            ],
            out_specs=pl.BlockSpec((1, block_t, C), lambda b, q, h: (b, q, 0)),
            scratch_shapes=[
                pltpu.VMEM((n_head, T, hd), cd),        # K cache (all heads)
                pltpu.VMEM((n_head, T, hd), cd),        # V cache (all heads)
                pltpu.VMEM((block_t, C), jnp.float32),  # out-proj accumulator
            ],
        ),
        compiler_params=pltpu.CompilerParams(
            # head axis is a reduction into acc_sc; the query-block axis reuses
            # K/V computed at qb == 0, so both must stay "arbitrary".
            dimension_semantics=("parallel", "arbitrary", "arbitrary"),
            vmem_limit_bytes=vmem_limit,
        ),
    )(xc,
      prep["wq"], prep["bq"], prep["wk"], prep["bk"], prep["wv"], prep["bv"],
      prep["abias"], prep["wp"], prep["bp"])


def self_attention_ref(x, params, *, n_embd, n_head):
    """Pure-JAX reference mirroring the PyTorch forward exactly."""
    B, T, C = x.shape
    hd = C // n_head
    qkv = x @ params["w_attn"].T + params["b_attn"]            # (B, T, 3C)
    q, k, v = jnp.split(qkv, 3, axis=2)
    q = q.reshape(B, T, n_head, hd).transpose(0, 2, 1, 3)
    k = k.reshape(B, T, n_head, hd).transpose(0, 2, 1, 3)
    v = v.reshape(B, T, n_head, hd).transpose(0, 2, 1, 3)
    att = (q @ jnp.swapaxes(k, -2, -1)) * (1.0 / math.sqrt(hd))
    abias = (params["bias"] @ params["w_bias_proj"].T
             + params["b_bias_proj"]).transpose(2, 0, 1)       # (n_head, T, T)
    att = att + abias[None]
    att = jax.nn.softmax(att, axis=-1)
    y = att @ v                                                # (B, nh, T, hd)
    y = y.transpose(0, 2, 1, 3).reshape(B, T, C)
    return y @ params["w_proj"].T + params["b_proj"]


def make_params(key, *, n_embd, n_head, T, bias_feat):
    ks = jax.random.split(key, 7)
    s = 0.1
    return {
        # nn.Linear stores weight as (out, in); we keep that convention here.
        "w_attn": s * jax.random.normal(ks[0], (3 * n_embd, n_embd), jnp.float32),
        "b_attn": s * jax.random.normal(ks[1], (3 * n_embd,), jnp.float32),
        "w_proj": s * jax.random.normal(ks[2], (n_embd, n_embd), jnp.float32),
        "b_proj": s * jax.random.normal(ks[3], (n_embd,), jnp.float32),
        # registered buffer `bias`: (T, T, bias_feat)
        "bias": jax.random.normal(ks[4], (T, T, bias_feat), jnp.float32),
        "w_bias_proj": s * jax.random.normal(ks[5], (n_head, bias_feat), jnp.float32),
        "b_bias_proj": s * jax.random.normal(ks[6], (n_head,), jnp.float32),
    }


if __name__ == "__main__":
    key = jax.random.PRNGKey(0)

    # ---- Case 1: single query block (block_t == T). ----
    B, T, n_embd, n_head, bias_feat = 2, 16, 32, 4, 8
    kx, kp, key = jax.random.split(key, 3)
    x = jax.random.normal(kx, (B, T, n_embd), jnp.float32)
    params = make_params(kp, n_embd=n_embd, n_head=n_head, T=T, bias_feat=bias_feat)
    ref = self_attention_ref(x, params, n_embd=n_embd, n_head=n_head)

    # f32 compute path (matches the PyTorch-equivalent reference closely).
    prep32 = prepare_attention_params(params, n_embd=n_embd, n_head=n_head,
                                      compute_dtype=jnp.float32)
    out32 = jax.block_until_ready(
        self_attention_pallas(x, prep32, n_embd=n_embd, n_head=n_head))
    assert out32.shape == (B, T, n_embd)
    assert bool(jnp.all(jnp.isfinite(out32)))
    assert bool(jnp.allclose(out32, ref, rtol=1e-2, atol=1e-2)), "f32 mismatch vs ref"

    # bf16 MXU path (bf16 operands, f32 accumulation, f32 softmax).
    prep16 = prepare_attention_params(params, n_embd=n_embd, n_head=n_head,
                                      compute_dtype=jnp.bfloat16)
    out16 = jax.block_until_ready(
        self_attention_pallas(x, prep16, n_embd=n_embd, n_head=n_head))
    assert bool(jnp.all(jnp.isfinite(out16)))
    assert bool(jnp.allclose(out16, ref, rtol=5e-2, atol=5e-2)), "bf16 mismatch vs ref"

    # ---- Case 2: multiple query blocks (exercises K/V cache reuse across qb
    #      and the in-kernel pl.ds query slice). ----
    B2, T2, block_t2 = 2, 32, 16
    kx2, kp2 = jax.random.split(key)
    x2 = jax.random.normal(kx2, (B2, T2, n_embd), jnp.float32)
    params2 = make_params(kp2, n_embd=n_embd, n_head=n_head, T=T2, bias_feat=bias_feat)
    ref2 = self_attention_ref(x2, params2, n_embd=n_embd, n_head=n_head)
    prep2 = prepare_attention_params(params2, n_embd=n_embd, n_head=n_head,
                                     compute_dtype=jnp.float32)
    out2 = jax.block_until_ready(
        self_attention_pallas(x2, prep2, n_embd=n_embd, n_head=n_head,
                              block_t=block_t2))
    assert bool(jnp.all(jnp.isfinite(out2)))
    assert bool(jnp.allclose(out2, ref2, rtol=1e-2, atol=1e-2)), "multi-block mismatch"

    print("KERNEL_OK")
</pallas_src>

<mosaic_0001>
module attributes {stable_mosaic.version = 11 : i64} {
  func.func @_self_attention_kernel(%arg0: i32, %arg1: i32, %arg2: i32, %arg3: memref<1x16x32xf32, #tpu.memory_space<vmem>>, %arg4: memref<4x32x8xf32, #tpu.memory_space<vmem>>, %arg5: memref<4x1x8xf32, #tpu.memory_space<vmem>>, %arg6: memref<4x32x8xf32, #tpu.memory_space<vmem>>, %arg7: memref<4x1x8xf32, #tpu.memory_space<vmem>>, %arg8: memref<4x32x8xf32, #tpu.memory_space<vmem>>, %arg9: memref<4x1x8xf32, #tpu.memory_space<vmem>>, %arg10: memref<1x16x16xf32, #tpu.memory_space<vmem>>, %arg11: memref<4x8x32xf32, #tpu.memory_space<vmem>>, %arg12: memref<1x32xf32, #tpu.memory_space<vmem>>, %arg13: memref<1x16x32xf32, #tpu.memory_space<vmem>>, %arg14: memref<4x16x8xf32, #tpu.memory_space<vmem>>, %arg15: memref<4x16x8xf32, #tpu.memory_space<vmem>>, %arg16: memref<16x32xf32, #tpu.memory_space<vmem>>) attributes {dimension_semantics = [#tpu.dimension_semantics<parallel>, #tpu.dimension_semantics<arbitrary>, #tpu.dimension_semantics<arbitrary>], iteration_bounds = array<i64: 2, 1, 4>, scalar_prefetch = 0 : i64, scratch_operands = 3 : i64, tpu.core_type = #tpu.core_type<tc>, window_params = [{transform_indices = @transform_0, window_bounds = array<i64: 1, 16, 32>}, {pipeline_mode = #tpu.pipeline_mode<synchronous>, transform_indices = @transform_1, window_bounds = array<i64: 4, 32, 8>}, {pipeline_mode = #tpu.pipeline_mode<synchronous>, transform_indices = @transform_2, window_bounds = array<i64: 4, 1, 8>}, {pipeline_mode = #tpu.pipeline_mode<synchronous>, transform_indices = @transform_3, window_bounds = array<i64: 4, 32, 8>}, {pipeline_mode = #tpu.pipeline_mode<synchronous>, transform_indices = @transform_4, window_bounds = array<i64: 4, 1, 8>}, {pipeline_mode = #tpu.pipeline_mode<synchronous>, transform_indices = @transform_5, window_bounds = array<i64: 4, 32, 8>}, {pipeline_mode = #tpu.pipeline_mode<synchronous>, transform_indices = @transform_6, window_bounds = array<i64: 4, 1, 8>}, {transform_indices = @transform_7, window_bounds = array<i64: 1, 16, 16>}, {pipeline_mode = #tpu.pipeline_mode<synchronous>, transform_indices = @transform_8, window_bounds = array<i64: 4, 8, 32>}, {pipeline_mode = #tpu.pipeline_mode<synchronous>, transform_indices = @transform_9, window_bounds = array<i64: 1, 32>}, {transform_indices = @transform_10, window_bounds = array<i64: 1, 16, 32>}]} {
    %c0_i32 = arith.constant 0 : i32
    %0 = arith.cmpi eq, %arg1, %c0_i32 : i32
    %1 = arith.extui %0 : i1 to i32
    %c0_i32_0 = arith.constant 0 : i32
    %2 = arith.cmpi ne, %1, %c0_i32_0 : i32
    scf.if %2 {
      %c0_28 = arith.constant 0 : index
      %c0_29 = arith.constant 0 : index
      %c0_30 = arith.constant 0 : index
      %48 = vector.load %arg3[%c0_28, %c0_29, %c0_30] : memref<1x16x32xf32, #tpu.memory_space<vmem>>, vector<1x16x32xf32>
      %49 = vector.shape_cast %48 : vector<1x16x32xf32> to vector<16x32xf32>
      %50 = arith.index_cast %arg2 : i32 to index
      %c0_31 = arith.constant 0 : index
      %c0_32 = arith.constant 0 : index
      %51 = vector.load %arg6[%50, %c0_31, %c0_32] : memref<4x32x8xf32, #tpu.memory_space<vmem>>, vector<1x32x8xf32>
      %52 = vector.shape_cast %51 : vector<1x32x8xf32> to vector<32x8xf32>
      %cst_33 = arith.constant dense<0.000000e+00> : vector<16x8xf32>
      %53 = tpu.matmul %49, %52, %cst_33 {dimension_numbers = #tpu.dot_dimension_numbers<[1], [0], [0], [1], [0, 0, 1, 1], [], []>} : vector<16x32xf32>, vector<32x8xf32>, vector<16x8xf32> -> vector<16x8xf32>
      %54 = arith.index_cast %arg2 : i32 to index
      %c0_34 = arith.constant 0 : index
      %c0_35 = arith.constant 0 : index
      %55 = vector.load %arg7[%54, %c0_34, %c0_35] : memref<4x1x8xf32, #tpu.memory_space<vmem>>, vector<1x1x8xf32>
      %56 = vector.shape_cast %55 : vector<1x1x8xf32> to vector<1x8xf32>
      %57 = vector.broadcast %56 : vector<1x8xf32> to vector<16x8xf32>
      %58 = arith.addf %53, %57 : vector<16x8xf32>
      %59 = arith.index_cast %arg2 : i32 to index
      %c0_36 = arith.constant 0 : index
      %c0_37 = arith.constant 0 : index
      %60 = vector.load %arg8[%59, %c0_36, %c0_37] : memref<4x32x8xf32, #tpu.memory_space<vmem>>, vector<1x32x8xf32>
      %61 = vector.shape_cast %60 : vector<1x32x8xf32> to vector<32x8xf32>
      %cst_38 = arith.constant dense<0.000000e+00> : vector<16x8xf32>
      %62 = tpu.matmul %49, %61, %cst_38 {dimension_numbers = #tpu.dot_dimension_numbers<[1], [0], [0], [1], [0, 0, 1, 1], [], []>} : vector<16x32xf32>, vector<32x8xf32>, vector<16x8xf32> -> vector<16x8xf32>
      %63 = arith.index_cast %arg2 : i32 to index
      %c0_39 = arith.constant 0 : index
      %c0_40 = arith.constant 0 : index
      %64 = vector.load %arg9[%63, %c0_39, %c0_40] : memref<4x1x8xf32, #tpu.memory_space<vmem>>, vector<1x1x8xf32>
      %65 = vector.shape_cast %64 : vector<1x1x8xf32> to vector<1x8xf32>
      %66 = vector.broadcast %65 : vector<1x8xf32> to vector<16x8xf32>
      %67 = arith.addf %62, %66 : vector<16x8xf32>
      %68 = arith.index_cast %arg2 : i32 to index
      %c0_41 = arith.constant 0 : index
      %c0_42 = arith.constant 0 : index
      %69 = vector.load %arg14[%68, %c0_41, %c0_42] : memref<4x16x8xf32, #tpu.memory_space<vmem>>, vector<1x16x8xf32>
      %70 = vector.shape_cast %69 : vector<1x16x8xf32> to vector<16x8xf32>
      %71 = vector.shape_cast %58 : vector<16x8xf32> to vector<1x16x8xf32>
      tpu.vector_store %arg14[%68, %c0_41, %c0_42], %71 {strides = array<i32>} : memref<4x16x8xf32, #tpu.memory_space<vmem>>, vector<1x16x8xf32>,
      %72 = arith.index_cast %arg2 : i32 to index
      %c0_43 = arith.constant 0 : index
      %c0_44 = arith.constant 0 : index
      %73 = vector.load %arg15[%72, %c0_43, %c0_44] : memref<4x16x8xf32, #tpu.memory_space<vmem>>, vector<1x16x8xf32>
      %74 = vector.shape_cast %73 : vector<1x16x8xf32> to vector<16x8xf32>
      %75 = vector.shape_cast %67 : vector<16x8xf32> to vector<1x16x8xf32>
      tpu.vector_store %arg15[%72, %c0_43, %c0_44], %75 {strides = array<i32>} : memref<4x16x8xf32, #tpu.memory_space<vmem>>, vector<1x16x8xf32>,
    } else {
    }
    %c0 = arith.constant 0 : index
    %c0_1 = arith.constant 0 : index
    %c0_2 = arith.constant 0 : index
    %3 = vector.load %arg3[%c0, %c0_1, %c0_2] : memref<1x16x32xf32, #tpu.memory_space<vmem>>, vector<1x16x32xf32>
    %4 = vector.shape_cast %3 : vector<1x16x32xf32> to vector<16x32xf32>
    %5 = arith.index_cast %arg2 : i32 to index
    %c0_3 = arith.constant 0 : index
    %c0_4 = arith.constant 0 : index
    %6 = vector.load %arg4[%5, %c0_3, %c0_4] : memref<4x32x8xf32, #tpu.memory_space<vmem>>, vector<1x32x8xf32>
    %7 = vector.shape_cast %6 : vector<1x32x8xf32> to vector<32x8xf32>
    %cst = arith.constant dense<0.000000e+00> : vector<16x8xf32>
    %8 = tpu.matmul %4, %7, %cst {dimension_numbers = #tpu.dot_dimension_numbers<[1], [0], [0], [1], [0, 0, 1, 1], [], []>} : vector<16x32xf32>, vector<32x8xf32>, vector<16x8xf32> -> vector<16x8xf32>
    %9 = arith.index_cast %arg2 : i32 to index
    %c0_5 = arith.constant 0 : index
    %c0_6 = arith.constant 0 : index
    %10 = vector.load %arg5[%9, %c0_5, %c0_6] : memref<4x1x8xf32, #tpu.memory_space<vmem>>, vector<1x1x8xf32>
    %11 = vector.shape_cast %10 : vector<1x1x8xf32> to vector<1x8xf32>
    %12 = vector.broadcast %11 : vector<1x8xf32> to vector<16x8xf32>
    %13 = arith.addf %8, %12 : vector<16x8xf32>
    %14 = arith.index_cast %arg2 : i32 to index
    %c0_7 = arith.constant 0 : index
    %c0_8 = arith.constant 0 : index
    %15 = vector.load %arg14[%14, %c0_7, %c0_8] : memref<4x16x8xf32, #tpu.memory_space<vmem>>, vector<1x16x8xf32>
    %16 = vector.shape_cast %15 : vector<1x16x8xf32> to vector<16x8xf32>
    %cst_9 = arith.constant dense<0.000000e+00> : vector<16x16xf32>
    %17 = tpu.matmul %13, %16, %cst_9 {dimension_numbers = #tpu.dot_dimension_numbers<[1], [1], [0], [0], [0, 0, 1, 0], [], []>} : vector<16x8xf32>, vector<16x8xf32>, vector<16x16xf32> -> vector<16x16xf32>
    %c0_10 = arith.constant 0 : index
    %c0_11 = arith.constant 0 : index
    %c0_12 = arith.constant 0 : index
    %18 = vector.load %arg10[%c0_10, %c0_11, %c0_12] : memref<1x16x16xf32, #tpu.memory_space<vmem>>, vector<1x16x16xf32>
    %19 = vector.shape_cast %18 : vector<1x16x16xf32> to vector<16x16xf32>
    %20 = arith.addf %17, %19 : vector<16x16xf32>
    %cst_13 = arith.constant dense<0xFF800000> : vector<16xf32>
    %21 = vector.multi_reduction <maximumf>, %20, %cst_13 [1] : vector<16x16xf32> to vector<16xf32>
    %22 = vector.shape_cast %21 : vector<16xf32> to vector<16x1xf32>
    %23 = vector.broadcast %22 : vector<16x1xf32> to vector<16x16xf32>
    %24 = arith.subf %20, %23 : vector<16x16xf32>
    %25 = math.exp %24 : vector<16x16xf32>
    %cst_14 = arith.constant dense<0.000000e+00> : vector<16xf32>
    %26 = vector.multi_reduction <add>, %25, %cst_14 [1] : vector<16x16xf32> to vector<16xf32>
    %27 = vector.shape_cast %26 : vector<16xf32> to vector<16x1xf32>
    %28 = tpu.reciprocal %27 {approx = true} : vector<16x1xf32> -> vector<16x1xf32>
    %29 = vector.broadcast %28 : vector<16x1xf32> to vector<16x16xf32>
    %30 = arith.mulf %25, %29 : vector<16x16xf32>
    %31 = arith.index_cast %arg2 : i32 to index
    %c0_15 = arith.constant 0 : index
    %c0_16 = arith.constant 0 : index
    %32 = vector.load %arg15[%31, %c0_15, %c0_16] : memref<4x16x8xf32, #tpu.memory_space<vmem>>, vector<1x16x8xf32>
    %33 = vector.shape_cast %32 : vector<1x16x8xf32> to vector<16x8xf32>
    %cst_17 = arith.constant dense<0.000000e+00> : vector<16x8xf32>
    %34 = tpu.matmul %30, %33, %cst_17 {dimension_numbers = #tpu.dot_dimension_numbers<[1], [0], [0], [1], [0, 0, 1, 1], [], []>} : vector<16x16xf32>, vector<16x8xf32>, vector<16x8xf32> -> vector<16x8xf32>
    %c0_i32_18 = arith.constant 0 : i32
    %35 = arith.cmpi eq, %arg2, %c0_i32_18 : i32
    %36 = arith.extui %35 : i1 to i32
    %c0_i32_19 = arith.constant 0 : i32
    %37 = arith.cmpi ne, %36, %c0_i32_19 : i32
    scf.if %37 {
      %cst_28 = arith.constant 0.000000e+00 : f32
      %48 = vector.broadcast %cst_28 : f32 to vector<16x32xf32>
      %c0_29 = arith.constant 0 : index
      %c0_30 = arith.constant 0 : index
      %49 = vector.load %arg16[%c0_29, %c0_30] : memref<16x32xf32, #tpu.memory_space<vmem>>, vector<16x32xf32>
      tpu.vector_store %arg16[%c0_29, %c0_30], %48 {strides = array<i32>} : memref<16x32xf32, #tpu.memory_space<vmem>>, vector<16x32xf32>,
    } else {
    }
    %c0_20 = arith.constant 0 : index
    %c0_21 = arith.constant 0 : index
    %38 = vector.load %arg16[%c0_20, %c0_21] : memref<16x32xf32, #tpu.memory_space<vmem>>, vector<16x32xf32>
    %39 = arith.index_cast %arg2 : i32 to index
    %c0_22 = arith.constant 0 : index
    %c0_23 = arith.constant 0 : index
    %40 = vector.load %arg11[%39, %c0_22, %c0_23] : memref<4x8x32xf32, #tpu.memory_space<vmem>>, vector<1x8x32xf32>
    %41 = vector.shape_cast %40 : vector<1x8x32xf32> to vector<8x32xf32>
    %cst_24 = arith.constant dense<0.000000e+00> : vector<16x32xf32>
    %42 = tpu.matmul %34, %41, %cst_24 {dimension_numbers = #tpu.dot_dimension_numbers<[1], [0], [0], [1], [0, 0, 1, 1], [], []>} : vector<16x8xf32>, vector<8x32xf32>, vector<16x32xf32> -> vector<16x32xf32>
    %43 = arith.addf %38, %42 : vector<16x32xf32>
    %c0_25 = arith.constant 0 : index
    %c0_26 = arith.constant 0 : index
    %44 = vector.load %arg16[%c0_25, %c0_26] : memref<16x32xf32, #tpu.memory_space<vmem>>, vector<16x32xf32>
    tpu.vector_store %arg16[%c0_25, %c0_26], %43 {strides = array<i32>} : memref<16x32xf32, #tpu.memory_space<vmem>>, vector<16x32xf32>,
    %c3_i32 = arith.constant 3 : i32
    %45 = arith.cmpi eq, %arg2, %c3_i32 : i32
    %46 = arith.extui %45 : i1 to i32
    %c0_i32_27 = arith.constant 0 : i32
    %47 = arith.cmpi ne, %46, %c0_i32_27 : i32
    scf.if %47 {
      %c0_28 = arith.constant 0 : index
      %c0_29 = arith.constant 0 : index
      %48 = vector.load %arg16[%c0_28, %c0_29] : memref<16x32xf32, #tpu.memory_space<vmem>>, vector<16x32xf32>
      %c0_30 = arith.constant 0 : index
      %c0_31 = arith.constant 0 : index
      %49 = vector.load %arg12[%c0_30, %c0_31] : memref<1x32xf32, #tpu.memory_space<vmem>>, vector<1x32xf32>
      %50 = vector.broadcast %49 : vector<1x32xf32> to vector<16x32xf32>
      %51 = arith.addf %48, %50 : vector<16x32xf32>
      %c0_32 = arith.constant 0 : index
      %c0_33 = arith.constant 0 : index
      %c0_34 = arith.constant 0 : index
      %52 = vector.load %arg13[%c0_32, %c0_33, %c0_34] : memref<1x16x32xf32, #tpu.memory_space<vmem>>, vector<1x16x32xf32>
      %53 = vector.shape_cast %52 : vector<1x16x32xf32> to vector<16x32xf32>
      %54 = vector.shape_cast %51 : vector<16x32xf32> to vector<1x16x32xf32>
      tpu.vector_store %arg13[%c0_32, %c0_33, %c0_34], %54 {strides = array<i32>} : memref<1x16x32xf32, #tpu.memory_space<vmem>>, vector<1x16x32xf32>,
    } else {
    }
    return
  }
  func.func @transform_0(%arg0: i32, %arg1: i32, %arg2: i32) -> (i32, i32, i32) {
    %c0_i32 = arith.constant 0 : i32
    %c0_i32_0 = arith.constant 0 : i32
    %c0_i32_1 = arith.constant 0 : i32
    return %arg0, %c0_i32, %c0_i32_0 : i32, i32, i32
  }
  func.func @transform_1(%arg0: i32, %arg1: i32, %arg2: i32) -> (i32, i32, i32) {
    %c0_i32 = arith.constant 0 : i32
    %c0_i32_0 = arith.constant 0 : i32
    %c0_i32_1 = arith.constant 0 : i32
    %c0_i32_2 = arith.constant 0 : i32
    return %c0_i32, %c0_i32_0, %c0_i32_1 : i32, i32, i32
  }
  func.func @transform_2(%arg0: i32, %arg1: i32, %arg2: i32) -> (i32, i32, i32) {
    %c0_i32 = arith.constant 0 : i32
    %c0_i32_0 = arith.constant 0 : i32
    %c0_i32_1 = arith.constant 0 : i32
    %c0_i32_2 = arith.constant 0 : i32
    return %c0_i32, %c0_i32_0, %c0_i32_1 : i32, i32, i32
  }
  func.func @transform_3(%arg0: i32, %arg1: i32, %arg2: i32) -> (i32, i32, i32) {
    %c0_i32 = arith.constant 0 : i32
    %c0_i32_0 = arith.constant 0 : i32
    %c0_i32_1 = arith.constant 0 : i32
    %c0_i32_2 = arith.constant 0 : i32
    return %c0_i32, %c0_i32_0, %c0_i32_1 : i32, i32, i32
  }
  func.func @transform_4(%arg0: i32, %arg1: i32, %arg2: i32) -> (i32, i32, i32) {
    %c0_i32 = arith.constant 0 : i32
    %c0_i32_0 = arith.constant 0 : i32
    %c0_i32_1 = arith.constant 0 : i32
    %c0_i32_2 = arith.constant 0 : i32
    return %c0_i32, %c0_i32_0, %c0_i32_1 : i32, i32, i32
  }
  func.func @transform_5(%arg0: i32, %arg1: i32, %arg2: i32) -> (i32, i32, i32) {
    %c0_i32 = arith.constant 0 : i32
    %c0_i32_0 = arith.constant 0 : i32
    %c0_i32_1 = arith.constant 0 : i32
    %c0_i32_2 = arith.constant 0 : i32
    return %c0_i32, %c0_i32_0, %c0_i32_1 : i32, i32, i32
  }
  func.func @transform_6(%arg0: i32, %arg1: i32, %arg2: i32) -> (i32, i32, i32) {
    %c0_i32 = arith.constant 0 : i32
    %c0_i32_0 = arith.constant 0 : i32
    %c0_i32_1 = arith.constant 0 : i32
    %c0_i32_2 = arith.constant 0 : i32
    return %c0_i32, %c0_i32_0, %c0_i32_1 : i32, i32, i32
  }
  func.func @transform_7(%arg0: i32, %arg1: i32, %arg2: i32) -> (i32, i32, i32) {
    %c0_i32 = arith.constant 0 : i32
    %c0_i32_0 = arith.constant 0 : i32
    return %arg2, %arg1, %c0_i32 : i32, i32, i32
  }
  func.func @transform_8(%arg0: i32, %arg1: i32, %arg2: i32) -> (i32, i32, i32) {
    %c0_i32 = arith.constant 0 : i32
    %c0_i32_0 = arith.constant 0 : i32
    %c0_i32_1 = arith.constant 0 : i32
    %c0_i32_2 = arith.constant 0 : i32
    return %c0_i32, %c0_i32_0, %c0_i32_1 : i32, i32, i32
  }
  func.func @transform_9(%arg0: i32, %arg1: i32, %arg2: i32) -> (i32, i32) {
    %c0_i32 = arith.constant 0 : i32
    %c0_i32_0 = arith.constant 0 : i32
    %c0_i32_1 = arith.constant 0 : i32
    return %c0_i32, %c0_i32_0 : i32, i32
  }
  func.func @transform_10(%arg0: i32, %arg1: i32, %arg2: i32) -> (i32, i32, i32) {
    %c0_i32 = arith.constant 0 : i32
    %c0_i32_0 = arith.constant 0 : i32
    return %arg0, %arg1, %c0_i32 : i32, i32, i32
  }
}

</mosaic_0001>

<bundles_post_ra>
// kernel: tpu_custom_call.1
= control target key start
LH: loop header
LB: loop body
LE: loop exit
PB: predicated region body
PF: predicated region fallthrough
CT: control target
= control target key end

     0   :  { %s1343_s0 = inlined_call_operand.vmem [shape: f32[2,16,32], index: 0, kind: input, shape index: {}]   ;;  %s1344_s1 = inlined_call_operand.vmem [shape: f32[4,32,8], index: 1, kind: input, shape index: {}]   ;;  %s1345_s2 = inlined_call_operand.vmem [shape: f32[4,1,8], index: 2, kind: input, shape index: {}]   ;;  %s1346_s3 = inlined_call_operand.vmem [shape: f32[4,32,8], index: 3, kind: input, shape index: {}]   ;;  %s1347_s4 = inlined_call_operand.vmem [shape: f32[4,1,8], index: 4, kind: input, shape index: {}]   ;;  %s1348_s5 = inlined_call_operand.vmem [shape: f32[4,32,8], index: 5, kind: input, shape index: {}]   ;;  %s1349_s6 = inlined_call_operand.vmem [shape: f32[4,1,8], index: 6, kind: input, shape index: {}]   ;;  %s1350_s7 = inlined_call_operand.vmem [shape: f32[4,16,16], index: 7, kind: input, shape index: {}]   ;;  %s1351_s8 = inlined_call_operand.vmem [shape: f32[4,8,32], index: 8, kind: input, shape index: {}]   ;;  %s1352_s9 = inlined_call_operand.vmem [shape: f32[1,32], index: 9, kind: input, shape index: {}]   ;;  %s1353_s10 = inlined_call_operand.hbm [shape: f32[2,16,32], index: 10, kind: output, shape index: {}]  }
   0x1   :  { %1359 = sst [smem:[#allocation15_spill]] %s1346_s3 }
   0x2   :  { %15 = vsyncpa [#allocation6], 0 }
   0x3   :  { %17 = vsyncpa [#allocation6 + $0x1], 0  ;;  %s1123_s13 = smov 0   ;;  %s1125_s14 = smov 0  }
   0x4   :  { %s1127_s15 = smov 0   ;;  %s1129_s16 = smov 0  }
   0x5   :  { %s1131_s17 = smov 0   ;;  %s1133_s18 = smov 0  }
   0x6   :  { %s1135_s19 = smov 0   ;;  %s1137_s20 = smov 0  }
   0x7 LB: > { %1360 = sst [smem:[#allocation8_spill]] %s1043_s15  ;;  %s836_s21 = sadd.s32 4294967295, %s1063_s20   ;;  %s1063_s20 = sphi %s1137_s20, %s23_s20   ;;  %s1059_s19 = sphi %s1135_s19, %s1376_s19   ;;  %s1055_s18 = sphi %s1133_s18, %s1379_s18   ;;  %s1051_s17 = sphi %s1131_s17, %s1374_s17   ;;  %s1047_s16 = sphi %s1129_s16, %s1373_s16   ;;  %s1043_s15 = sphi %s1127_s15, %s1372_s15   ;;  %s1039_s14 = sphi %s1125_s14, %s1378_s14   ;;  %s1035_s13 = sphi %s1123_s13, %s1377_s13  }
   0x8   : > { %1361 = sst [smem:[#allocation9_spill]] %s1055_s18  ;;  %s837_s22 = sadd.s32 4294967294, %s1063_s20  }
   0x9   : > { %1362 = sst [smem:[#allocation10_spill]] %s1059_s19  ;;  %s35_s23 = sadd.s32 1, %s1055_s18 }
   0xa   : > { %p36_p0 = scmp.ge.s32.totalorder %s35_s23, 4  ;;  %s42_s24 = sadd.s32 1, %s1059_s19 }
   0xb   : > { %p283_p1 = scmp.ne.s32.totalorder %s1043_s15, %s1039_s14  ;;  %p284_p2 = scmp.eq.s32.totalorder %s836_s21, 7 }
   0xc   : > { %s1381_s23 = smov (%p36_p0, %s35_s23), 0  ;;  %s1383_s24 = smov (!%p36_p0, %s42_s24), %s1059_s19 }
   0xd   : > { %1363 = sst [smem:[#allocation11_spill]] %s1381_s23  ;;  %p1172_p3 = por %p284_p2, %p283_p1 }
   0xe   : > { %p289_p4 = scmp.ne.s32.totalorder %s1039_s14, %s1035_s13  ;;  %p44_p5 = scmp.ge.s32.totalorder %s1383_s24, 2 }
   0xf   : > { %p290_p6 = scmp.eq.s32.totalorder %s837_s22, 7  ;;  %p840_p7 = scmp.ge.s32.totalorder %s1063_s20, 1 }
  0x10   : > { %p353_p8 = scmp.lt.s32.totalorder %s1063_s20, 9  ;;  %s1385_s24 = smov (%p44_p5, %s1383_s24), 0 }
  0x11   : > { %1365 = sst [smem:[#allocation12_spill]] %s1385_s24  ;;  %p1182_p9 = por %p290_p6, %p289_p4 }
  0x12   : > { %p354_p10 = pnand %p840_p7, %p353_p8  ;;  %s268_s27 = ssub.s32 %s1059_s19, %s1385_s24 }
  0x13   : > { %s1366_s26 = scalar_select %p1182_p9, 1, 0 }
  0x14   : > { %s273_s28 = sadd.s32 1, %s1043_s15  ;;  %p271_p11 = scmp.eq.s32.totalorder %s268_s27, 0 }
  0x15   : > { %1367 = sst [smem:[#allocation13_spill]] %s1366_s26  ;;  %357 = sbr.rel (%p354_p10) target bundleno = 881 (0x371), region = 60 }
  0x16   : > { %s1190_s29 = scalar_select %p271_p11, %s1043_s15, %s273_s28  }
  0x17   : > { %s1193_s30 = sshll.u32 (!%p354_p10), %s1047_s16, 5  ;;  %p400_p12 = scmp.lt.s32.totalorder (!%p354_p10), %s1051_s17, 1 }
  0x18   : > { %1368 = sst [smem:[#allocation14_spill]] %s1190_s29  ;;  %s397_s22 = sand.u32 (!%p354_p10), 1, %s1039_s14  }
  0x19   : > { %s1369_s3 = sld [smem:[#allocation15_spill]] (!%p354_p10)  ;;  %s1204_s28 = sshll.u32 (!%p354_p10), %s397_s22, 4 }
  0x1a   : > { %s401_s27 = scalar_select %p400_p12, %s1051_s17, 1  ;;  %vm433_vm0 = vcmask 261120   ;;  %vm498_vm1 = vcmask 64512   ;;  %vm589_vm2 = vcmask 130048  }
  0x1b   : > { %s507_s19 = scalar_lea.vmem %s1344_s1, %s1193_s30  ;;  %s428_s26 = scalar_lea.vmem %s1347_s4, %s1047_s16 }
  0x1c   : > { %s872_s18 = sshll.u32 %s401_s27, 4  ;;  %v511_v6 = vld [vmem:[%s507_s19 + $0x18] sm:$0xff]  ;;  %v510_v7 = vld [vmem:[%s507_s19 + $0x10] sm:$0xff]  ;;  %v509_v8 = vld [vmem:[%s507_s19 + $0x8] sm:$0xff]  ;;  %s468_s29 = scalar_lea.vmem %s1349_s6, %s1047_s16 }
  0x1d   : > { %s404_s11 = scalar_lea.vmem %s1343_s0, %s872_s18  ;;  %v508_v9 = vld [vmem:[%s507_s19] sm:$0xff]  ;;  %s512_s18 = scalar_lea.vmem %s1345_s2, %s1047_s16 }
  0x1e   : > { %v421_v4 = vld [vmem:[%s404_s11 + $0x8] sm:$0xff]  ;;  %v420_v5 = vld [vmem:[%s404_s11] sm:$0xff]  ;;  %s463_s11 = scalar_lea.vmem %s1348_s5, %s1193_s30  ;;  %s851_s12 = sshll.u32 %s1047_s16, 4 }
  0x1f   : > { %s423_s21 = scalar_lea.vmem %s1369_s3, %s1193_s30  ;;  %v467_v10 = vld [vmem:[%s463_s11 + $0x18] sm:$0xff]  ;;  %v466_v11 = vld [vmem:[%s463_s11 + $0x10] sm:$0xff]  ;;  %v465_v12 = vld [vmem:[%s463_s11 + $0x8] sm:$0xff]  ;;  %s497_s3 = scalar_lea.vmem [#allocation2], %s851_s12 }
  0x20   : > { %v427_v0 = vld [vmem:[%s423_s21 + $0x18] sm:$0xff]  ;;  %v426_v1 = vld [vmem:[%s423_s21 + $0x10] sm:$0xff]  ;;  %v425_v2 = vld [vmem:[%s423_s21 + $0x8] sm:$0xff]  ;;  %879 = vmatpush.msra.mxu3 %v467_v10  ;;  %485 = vmatpush.msra.mxu1 %v467_v10  ;;  %p406_p13 = scmp.lt.s32.totalorder %s1047_s16, 3  ;;  %p862_p0 = scmp.ne.s32.totalorder %s1047_s16, 0 }
  0x21   : > { %875 = vmatpush.msra.mxu2 %v427_v0  ;;  %452 = vmatpush.msra.mxu0 %v427_v0  ;;  %v424_v3 = vld [vmem:[%s423_s21] sm:$0xff] }
  0x22   : > { %880 = vmatpush.msra.mxu3 %v466_v11  ;;  %486 = vmatpush.msra.mxu1 %v466_v11  ;;  %v464_v13 = vld [vmem:[%s463_s11] sm:$0xff]  ;;  %s407_s21 = scalar_select %p406_p13, %s1047_s16, 3 }
  0x23   : > { %876 = vmatpush.msra.mxu2 %v426_v1  ;;  %453 = vmatpush.msra.mxu0 %v426_v1  ;;  %v957_v14 = vld [vmem:[%s428_s26] ss:$0 sm:$0xff] }
  0x24   : > { %881 = vmatpush.msra.mxu3 %v465_v12  ;;  %487 = vmatpush.msra.mxu1 %v465_v12  ;;  %v958_v21 = vld [vmem:[%s512_s18] ss:$0 sm:$0xff]  ;;  %s1257_s18 = scalar_lea.vmem [#allocation3], %s851_s12  ;;  %s873_s27 = sshll.u32 %s407_s21, 4 }
  0x25   : > { %877 = vmatpush.msra.mxu2 %v425_v2  ;;  %454 = vmatpush.msra.mxu0 %v425_v2  ;;  %v959_v26 = vld [vmem:[%s468_s29] ss:$0 sm:$0xff]  ;;  %s413_s30 = scalar_lea.vmem %s1350_s7, %s873_s27  ;;  %s1277_s29 = scalar_lea.vmem [#allocation5], %s1204_s28 }
  0x26   : > { %882 = vmatpush.msra.mxu3 %v464_v13  ;;  %488 = vmatpush.msra.mxu1 %v464_v13  ;;  %v551_v30 = vld [vmem:[%s413_s30] sm:$0xff]  ;;  %v552_v34 = vld [vmem:[%s413_s30 + $0x8] sm:$0xff] }
  0x27   : > { %878 = vmatpush.msra.mxu2 %v424_v3  ;;  %455 = vmatpush.msra.mxu0 %v424_v3 }
  0x28   : > { %848 = vmatmul.msk.f32.vlgmr.msra.gmra.mxu2 %vm433_vm0, %v421_v4  ;;  %847 = vmatmul.msk.f32.vlgmr.msra.gmra.mxu0 %vm433_vm0, %v420_v5 }
  0x29   : > { %536 = vmatpush.msrb.mxu2 %v511_v6  ;;  %850 = vmatmul.msk.f32.vlgmr.msra.gmra.mxu3 %vm433_vm0, %v421_v4 }
  0x2a   : > { %849 = vmatmul.msk.f32.vlgmr.msra.gmra.mxu1 %vm433_vm0, %v420_v5 }
  0x2b   : > { %537 = vmatpush.msrb.mxu2 %v510_v7 }
  0x2d   : > { %538 = vmatpush.msrb.mxu2 %v509_v8 }
  0x2f   : > { %539 = vmatpush.msrb.mxu2 %v508_v9 }
  0x30   : > { %853 = vmatmul.msk.f32.vlgmr.msrb.gmra.mxu2 %vm433_vm0, %v420_v5 }
  0x38   : > { %854 = vmatmul.msk.f32.gmra.mxu2 %vm433_vm0, %v421_v4 }
  0xa5   : > { %v457_v15 = vpop.f32.mrf.mxu0 }
  0xa6   : > { %v458_v16 = vadd.f32 %v957_v14, %v457_v15 }
  0xa7   : > { %v490_v38 = vpop.f32.mrf.mxu1 }
  0xa8   : > { %499 = vst.msk [vmem:[%s497_s3] sm:$0xff] %vm498_vm1, %v458_v16  ;;  %v491_v39 = vadd.f32 %v959_v26, %v490_v38 }
  0xaa   : > { %502 = vst.msk [vmem:[%s1257_s18] sm:$0xff] %vm498_vm1, %v491_v39 }
  0xab   : > { %v460_v17 = vpop.f32.mrf.mxu2 }
  0xac   : > { %v461_v18 = vadd.f32 %v957_v14, %v460_v17  ;;  %v493_v27 = vpop.f32.mrf.mxu3 }
  0xad   : > { %v494_v28 = vadd.f32 %v959_v26, %v493_v27 }
  0xae   : > { %500 = vst.msk [vmem:[%s497_s3 + $0x8] sm:$0xff] %vm498_vm1, %v461_v18 }
  0xaf   : > { %v549_v22 = vld [vmem:[%s497_s3] sm:$0xff]  ;;  %503 = vst.msk [vmem:[%s1257_s18 + $0x8] sm:$0xff] %vm498_vm1, %v494_v28 }
  0xb1   : > { %v613_v50 = vld [vmem:[%s1257_s18] sm:$0xff] }
  0xb3   : > { %v541_v19 = vpop.f32.mrf.mxu2 }
  0xb4   : > { %v542_v23 = vadd.f32 %v958_v21, %v541_v19 }
  0xb5   : > { %v550_v20 = vld [vmem:[%s497_s3 + $0x8] sm:$0xff] }
  0xb6   : > { %856 = vmatpush.xpose.msk.msrb.mxu3 %vm498_vm1, %v550_v20  ;;  %v614_v29 = vld [vmem:[%s1257_s18 + $0x8] sm:$0xff] }
  0xb7   : > { %635 = vmatpush.msrb.mxu0 %v614_v29 }
  0xb9   : > { %636 = vmatpush.msrb.mxu0 %v613_v50 }
  0xba   : > { %857 = vmatpush.xpose.msk.msrb.mxu3 %vm498_vm1, %v549_v22 }
  0xbb   : > { %v544_v24 = vpop.f32.mrf.mxu2 }
  0xbc   : > { %v545_v25 = vadd.f32 %v958_v21, %v544_v24 }
  0xbd   : > { %858 = vmatmul.msk.f32.vlgmr.msrb.gmra.mxu3 %vm498_vm1, %v542_v23 }
  0xc5   : > { %859 = vmatmul.msk.f32.gmra.mxu3 %vm498_vm1, %v545_v25 }
 0x140   : > { %v583_v31 = vpop.f32.mrf.mxu3 }
 0x141   : > { %v584_v32 = vadd.f32 %v583_v31, %v551_v30 }
 0x143   : > { %v590_v33 = vsel %vm589_vm2, %v584_v32, -inf }
 0x144   : > { %591 = vmax.xlane.f32.xlu0 %v590_v33 }
 0x148   : > { %v586_v35 = vpop.f32.mrf.mxu3 }
 0x149   : > { %v587_v36 = vadd.f32 %v586_v35, %v552_v34 }
 0x14b   : > { %v593_v37 = vsel %vm589_vm2, %v587_v36, -inf }
 0x14c   : > { %594 = vmax.xlane.f32.xlu0 %v593_v37 }
 0x1b7   : > { %v592_v40 = vpop.xlane.xlu0 %591 }
 0x1b8   : > { %v596_v41 = vsub.f32 %v584_v32, %v592_v40 }
 0x1ba   : > { %v598_v42 = vmul.f32 1.442695, %v596_v41 }
 0x1bc   : > { %960 = vpow2.f32 %v598_v42 }
 0x1bf   : > { %v595_v43 = vpop.xlane.xlu0 %594 }
 0x1c0   : > { %v597_v44 = vsub.f32 %v587_v36, %v595_v43 }
 0x1c2   : > { %v961_v45 = vpop.eup %960  ;;  %v600_v46 = vmul.f32 1.442695, %v597_v44 }
 0x1c3   : > { %v602_v47 = vsel %vm589_vm2, %v961_v45, 0.0 }
 0x1c4   : > { %962 = vpow2.f32 %v600_v46  ;;  %603 = vadd.xlane.f32.xlu1 %v602_v47 }
 0x1ca   : > { %v963_v48 = vpop.eup %962 }
 0x1cb   : > { %v605_v49 = vsel %vm589_vm2, %v963_v48, 0.0 }
 0x1cc   : > { %606 = vadd.xlane.f32.xlu1 %v605_v49 }
 0x237   : > { %v604_v51 = vpop.xlane.xlu1 %603 }
 0x238   : > { %964 = vrcp.f32 %v604_v51 }
 0x23e   : > { %v965_v52 = vpop.eup %964 }
 0x23f   : > { %v607_v53 = vpop.xlane.xlu1 %606  ;;  %v610_v54 = vmul.f32 %v965_v52, %v961_v45 }
 0x240   : > { %966 = vrcp.f32 %v607_v53 }
 0x241   : > { %860 = vmatmul.msk.f32.vlgmr.msrb.gmra.mxu0 %vm589_vm2, %v610_v54 }
 0x246   : > { %v967_v55 = vpop.eup %966 }
 0x247   : > { %v611_v56 = vmul.f32 %v967_v55, %v963_v48 }
 0x249   : > { %861 = vmatmul.msk.f32.gmra.mxu0 %vm589_vm2, %v611_v56 }
 0x2be   : > { %v638_v57 = vpop.f32.mrf.mxu0 }
 0x2c2   : > { %647 = sbr.rel (%p862_p0) target bundleno = 714 (0x2ca), region = 68 }
 0x2c6   : > { %v641_v58 = vpop.f32.mrf.mxu0 }
 0x2c7   : > { %v1065_v59 = vmov 0.0  }
 0x2c8   : > { %648 = vst.msk [vmem:[#allocation4] sm:$0xff] %vm433_vm0, %v1065_v59 }
 0x2c9   : > { %649 = vst.msk [vmem:[#allocation4 + $0x8] sm:$0xff] %vm433_vm0, %v1065_v59 }
 0x2ca PF: > { %s863_s12 = sshll.u32 %s1047_s16, 3  ;;  %p866_p1 = scmp.ne.s32.totalorder %s1047_s16, 3 }
 0x2cb   : > { %s653_s23 = scalar_lea.vmem %s1351_s8, %s863_s12 }
 0x2cc   : > { %v654_v60 = vld [vmem:[%s653_s23] sm:$0xff] }
 0x2cd   : > { %676 = vmatpush.msrb.mxu1 %v654_v60 }
 0x2ce   : > { %864 = vmatmul.msk.f32.vlgmr.msrb.gmra.mxu1 %vm498_vm1, %v638_v57 }
 0x2cf   : > { %v650_v61 = vld [vmem:[#allocation4] sm:$0xff] }
 0x2d0   : > { %v651_v0 = vld [vmem:[#allocation4 + $0x8] sm:$0xff] }
 0x2d6   : > { %865 = vmatmul.msk.f32.gmra.mxu1 %vm498_vm1, %v641_v58 }
 0x34b   : > { %v678_v62 = vpop.f32.mrf.mxu1 }
 0x34c   : > { %v684_v63 = vadd.f32 %v678_v62, %v650_v61 }
 0x34e   : > { %686 = vst.msk [vmem:[#allocation4] sm:$0xff] %vm433_vm0, %v684_v63 }
 0x352   : > { %691 = sbr.rel (%p866_p1) target bundleno = 865 (0x361), region = 72 }
 0x353   : > { %v681_v1 = vpop.f32.mrf.mxu1 }
 0x354   : > { %v685_v2 = vadd.f32 %v681_v1, %v651_v0 }
 0x356   : > { %687 = vst.msk [vmem:[#allocation4 + $0x8] sm:$0xff] %vm433_vm0, %v685_v2 }
 0x357   : > { %v692_v3 = vld [vmem:[#allocation4] sm:$0xff] }
 0x358   : > { %v968_v4 = vld [vmem:[%s1352_s9] ss:$0 sm:$0xff] }
 0x359   : > { %v698_v6 = vadd.f32 %v968_v4, %v692_v3 }
 0x35b   : > { %700 = vst.msk [vmem:[%s1277_s29] sm:$0xff] %vm433_vm0, %v698_v6 }
 0x35d   : > { %v693_v5 = vld [vmem:[#allocation4 + $0x8] sm:$0xff] }
 0x35e   : > { %v699_v7 = vadd.f32 %v968_v4, %v693_v5 }
 0x360   : > { %701 = vst.msk [vmem:[%s1277_s29 + $0x8] sm:$0xff] %vm433_vm0, %v699_v7 }
 0x361 PF: > { %s874_s16 = sshll.u32 %s1051_s17, 4  ;;  %s717_s27 = sshll.u32 %s1277_s29, 4  ;;  %s718_s27 = int_to_ptr.vmem [resolvable:$true] %s717_s27 }
 0x362   : > { %s716_s21 = scalar_lea.hbm %s1353_s10, %s874_s16  ;;  %s703_s19 = scalar_lea.sflag [#allocation6], %s397_s22 }
 0x363   : > { %s719_s11 = sshll.u32 %s716_s21, 4  ;;  %s989_s17 = scalar_lea.hbm %s1353_s10, 32  ;;  %s720_s11 = int_to_ptr.hbm [resolvable:$true] %s719_s11 }
 0x364   : > { %s983_s30 = sshra.s32 %s720_s11, 4  ;;  %s984_s30 = int_to_ptr.hbm [resolvable:$true] %s983_s30 }
 0x365   : > { %s985_s12 = scalar_lea.hbm %s984_s30, 16  ;;  %p990_p6 = scmp.lt.s32.totalorder %s984_s30, %s1353_s10 }
 0x366   : > { %p986_p2 = scmp.ne.s32.totalorder %s984_s30, %s985_s12  ;;  %p991_p7 = scmp.lt.s32.totalorder %s989_s17, %s985_s12 }
 0x368   : > { %p987_p4 = pnand %p986_p2, %p1172_p3  ;;  %p992_p8 = por %p991_p7, %p990_p6 }
 0x36a   : > { %p988_p5 = pneg %p987_p4 }
 0x36c   : > { %p993_p10 = pnand %p992_p8, %p988_p5 }
 0x36e   : > { %996 = shalt.err (!%p993_p10)
}
 0x36f   : > { %s1066_s22 = smov 128   ;;  %s1067_s29 = smov 8  }
 0x370   : > { %883 = dma.vmem_to_hbm [thread:$0]  (%p1172_p3), %s718_s27, 256, %s720_s11, %s703_s19, %s1066_s22, %s1066_s22, %s1067_s29  }
 0x371 PF: > { %p889_p11 = scmp.ge.s32.totalorder %s1063_s20, 2  ;;  %s734_s16 = sand.u32 1, %s1035_s13  }
 0x372   : > { %s735_s24 = scalar_lea.sflag [#allocation6], %s734_s16 }
 0x373   : > { %p886_p12 = pnand %p889_p11, %p1182_p9 }
 0x375   : > { %p887_p13 = pneg %p886_p12 }
 0x377   : > { %1030 = dma.done.wait (%p887_p13), %s735_s24, 256  }
 0x378   : > { %1032 = vsyncadd (%p887_p13), %s735_s24, 4294967040  ;;  %s23_s20 = sadd.s32 1, %s1063_s20   ;;  %s1371_s18 = sld [smem:[#allocation8_spill]] }
 0x379   : > { %p20_p0 = scmp.ge.s32.totalorder %s23_s20, 10   ;;  %s1372_s15 = sld [smem:[#allocation14_spill]] }
 0x37a   : > { %s1373_s16 = sld [smem:[#allocation9_spill]]  ;;  %s1377_s13 = smov %s1039_s14 }
 0x37b   : > { %s1374_s17 = sld [smem:[#allocation10_spill]] }
 0x37c   : > { %s1375_s25 = sld [smem:[#allocation11_spill]] }
 0x37d   : > { %s1376_s19 = sld [smem:[#allocation12_spill]] }
 0x37e   : > { %s1378_s14 = smov %s1371_s18  ;;  %22 = sbr.rel (!%p20_p0) target bundleno = 7 (0x7), region = 121 }
 0x382   : > { %s1379_s18 = smov %s1375_s25 }
 0x383   :  { %741 = vsyncpa [#allocation6], 1 }
 0x384   :  { %743 = vsyncpa [#allocation6 + $0x1], 1 }

</bundles_post_ra>
